<compile_context>
chip_gen: v7x
topology: tpu7x:2x2x1
jax: 0.10.0
libtpu: 0.0.40
codegen_flags: <defaults>
</compile_context>

<pallas_src>
import jax
import jax.numpy as jnp
from jax.experimental import pallas as pl
from jax.experimental.pallas import tpu as pltpu


def _add_pos_kernel(x_ref, pos_ref, o_ref):
    # x_ref:   (row_tile, col_tile)  activations tile (lane-dense)
    # pos_ref: (1,        col_tile)  positional row, broadcast over the rows
    # TODO(synk): dropout is p=0.0 (identity) in this module; nonzero-p
    # training-mode dropout would need pltpu.prng_seed / prng_random_bits here.
    o_ref[...] = (x_ref[...] + pos_ref[...]).astype(o_ref.dtype)


def _chip_tuning():
    """Per-generation (tile_budget_bytes, vmem_limit_bytes_or_None, min_parallel_blocks)."""
    kind = ""
    try:
        kind = jax.devices()[0].device_kind.lower()
    except Exception:
        pass
    if "v7" in kind:
        # 64 MiB physical VMEM, ~3.2 TB/s HBM, 2 TensorCores: big tiles, >=4 blocks.
        return 24 * 1024 * 1024, 48 * 1024 * 1024, 4
    if "v6" in kind:
        # 32 MiB default scoped VMEM (of 128 MiB physical): bigger tiles, no limit bump.
        return 24 * 1024 * 1024, None, 2
    # v5e (16 MiB default scoped VMEM) or unknown: stay conservative.
    return 12 * 1024 * 1024, None, 2


def _choose_tiles(B, F, itemsize, budget, min_blocks):
    """Pick (row_tile, col_tile) for the flattened [B, F] broadcast-add.

    Footprint ~ 2x(x tile) + 2x(out tile) + 2x(pos row) double-buffered; the
    6x factor below keeps that comfortably inside `budget`.
    """
    # Sub-32-bit dtypes pack rows along sublanes: f32 -> 8, bf16 -> 16, int8/fp8 -> 32.
    row_gran = max(8, 32 // itemsize)

    # Column tile: multiple of 128 lanes, or the full trailing dim.
    if F % 128 != 0:
        col_tile = F
    else:
        max_cols = (budget // (6 * row_gran * itemsize)) // 128 * 128
        col_tile = min(F, max(128, max_cols))

    # Row tile: multiple of the packing granularity, or the whole (small) batch.
    if B <= row_gran:
        row_tile = B
    else:
        rows = budget // (6 * col_tile * itemsize)
        rows = max(row_gran, (rows // row_gran) * row_gran)
        row_tile = min(rows, max(row_gran, (B // row_gran) * row_gran))

    # Non-trivial problems should yield >= min_blocks parallel blocks so both
    # v7x TensorCores get work and prologue/compute/epilogue can overlap.
    total_bytes = B * F * itemsize
    if total_bytes >= 4 * 1024 * 1024:
        n_blocks = pl.cdiv(B, row_tile) * pl.cdiv(F, col_tile)
        if n_blocks < min_blocks and B > row_gran:
            target = max(row_gran, ((B // min_blocks) // row_gran) * row_gran)
            row_tile = min(row_tile, target)
            n_blocks = pl.cdiv(B, row_tile) * pl.cdiv(F, col_tile)
        if n_blocks < min_blocks and F % 128 == 0 and F >= 128 * min_blocks:
            target = max(128, ((F // min_blocks) // 128) * 128)
            col_tile = min(col_tile, target)

    return row_tile, col_tile


def learnable_positional_embedding(input_embeddings, pos_table, *,
                                   donate_input=False, force_pallas=False):
    """input_embeddings: [B, S, E]; pos_table: [max_pos, E] (learnable weights)."""
    B, S, E = input_embeddings.shape
    max_pos, E2 = pos_table.shape
    assert E == E2 and S <= max_pos

    F = S * E
    out_dtype = input_embeddings.dtype

    # Lane-dense views: activations [B, F]; first S rows of the table as one [1, F] row.
    x2 = input_embeddings.reshape(B, F)
    pos_row = jax.lax.slice_in_dim(pos_table, 0, S, axis=0).reshape(1, F)
    if pos_row.dtype != out_dtype:
        # One-time cast outside the kernel: avoids promoting every x tile to f32
        # inside, and halves the pos row's HBM bytes for bf16 activations.
        pos_row = pos_row.astype(out_dtype)

    budget, vmem_limit, min_blocks = _chip_tuning()
    itemsize = x2.dtype.itemsize
    total_bytes = B * F * itemsize

    # Tiny problems (and un-tileable trailing dims that would blow the budget)
    # are cheaper as a plain fused XLA add than as a standalone pallas_call.
    if (not force_pallas and total_bytes < 256 * 1024) or (
            F % 128 != 0 and 6 * 8 * F * itemsize > budget):
        return (x2 + pos_row).reshape(B, S, E)

    row_tile, col_tile = _choose_tiles(B, F, itemsize, budget, min_blocks)

    # Grid: columns OUTERMOST, rows innermost -> the (1, col_tile) positional
    # slab's block index (0, c) is invariant across the inner row axis, so it
    # stays resident and is only re-DMA'd when the column stripe changes.
    grid = (pl.cdiv(F, col_tile), pl.cdiv(B, row_tile))

    out2 = pl.pallas_call(
        _add_pos_kernel,
        out_shape=jax.ShapeDtypeStruct((B, F), out_dtype),
        grid_spec=pltpu.PrefetchScalarGridSpec(
            num_scalar_prefetch=0,
            grid=grid,
            in_specs=[
                pl.BlockSpec((row_tile, col_tile), lambda c, r: (r, c)),
                pl.BlockSpec((1, col_tile), lambda c, r: (0, c)),
            ],
            out_specs=pl.BlockSpec((row_tile, col_tile), lambda c, r: (r, c)),
        ),
        compiler_params=pltpu.CompilerParams(
            dimension_semantics=("parallel", "parallel"),
            vmem_limit_bytes=vmem_limit,
        ),
        input_output_aliases=({0: 0} if donate_input else {}),
    )(x2, pos_row)

    return out2.reshape(B, S, E)


if __name__ == "__main__":
    # Module config: embed_dim=32, max_position_embeddings=1024, dropout=0.0
    embed_dim = 32
    max_position_embeddings = 1024
    batch, seq = 2, 8

    key = jax.random.PRNGKey(0)
    k_x, k_w, k_x2, k_w2 = jax.random.split(key, 4)

    # Deterministic "learnable" embedding table (torch.nn.Embedding ~ N(0,1) init).
    pos_table = jax.random.normal(
        k_w, (max_position_embeddings, embed_dim), dtype=jnp.float32)
    # Input embeddings [B, S, E] (batch-first).
    x = jax.random.normal(k_x, (batch, seq, embed_dim), dtype=jnp.float32)

    # Module-sized test: force the Pallas path (normally this tiny shape would
    # take the XLA early-out).
    out = learnable_positional_embedding(x, pos_table, force_pallas=True)
    out = jax.block_until_ready(out)
    ref = x + pos_table[:seq][None, :, :]
    assert out.shape == (batch, seq, embed_dim)
    assert jnp.allclose(out, ref, atol=1e-6, rtol=1e-6)

    # Larger shape exercising the multi-block tiled path (pos row resident
    # across the inner row axis).
    B2, S2, E2 = 32, 256, 128
    pos_table2 = jax.random.normal(
        k_w2, (max_position_embeddings, E2), dtype=jnp.float32)
    x_big = jax.random.normal(k_x2, (B2, S2, E2), dtype=jnp.float32)
    out_big = jax.block_until_ready(
        learnable_positional_embedding(x_big, pos_table2, force_pallas=True))
    ref_big = x_big + pos_table2[:S2][None, :, :]
    assert jnp.allclose(out_big, ref_big, atol=1e-6, rtol=1e-6)

    print("KERNEL_OK")
</pallas_src>

<mosaic_0001>
module attributes {stable_mosaic.version = 11 : i64} {
  func.func @_add_pos_kernel(%arg0: i32, %arg1: i32, %arg2: memref<2x256xf32, #tpu.memory_space<vmem>>, %arg3: memref<1x256xf32, #tpu.memory_space<vmem>>, %arg4: memref<2x256xf32, #tpu.memory_space<vmem>>) attributes {dimension_semantics = [#tpu.dimension_semantics<parallel>, #tpu.dimension_semantics<parallel>], iteration_bounds = array<i64: 1, 1>, scalar_prefetch = 0 : i64, scratch_operands = 0 : i64, tpu.core_type = #tpu.core_type<tc>, window_params = [{transform_indices = @transform_0, window_bounds = array<i64: 2, 256>}, {transform_indices = @transform_1, window_bounds = array<i64: 1, 256>}, {transform_indices = @transform_2, window_bounds = array<i64: 2, 256>}]} {
    %c0 = arith.constant 0 : index
    %c0_0 = arith.constant 0 : index
    %0 = vector.load %arg2[%c0, %c0_0] : memref<2x256xf32, #tpu.memory_space<vmem>>, vector<2x256xf32>
    %c0_1 = arith.constant 0 : index
    %c0_2 = arith.constant 0 : index
    %1 = vector.load %arg3[%c0_1, %c0_2] : memref<1x256xf32, #tpu.memory_space<vmem>>, vector<1x256xf32>
    %2 = vector.broadcast %1 : vector<1x256xf32> to vector<2x256xf32>
    %3 = arith.addf %0, %2 : vector<2x256xf32>
    %c0_3 = arith.constant 0 : index
    %c0_4 = arith.constant 0 : index
    %4 = vector.load %arg4[%c0_3, %c0_4] : memref<2x256xf32, #tpu.memory_space<vmem>>, vector<2x256xf32>
    tpu.vector_store %arg4[%c0_3, %c0_4], %3 {strides = array<i32>} : memref<2x256xf32, #tpu.memory_space<vmem>>, vector<2x256xf32>,
    return
  }
  func.func @transform_0(%arg0: i32, %arg1: i32) -> (i32, i32) {
    %c0_i32 = arith.constant 0 : i32
    return %arg1, %arg0 : i32, i32
  }
  func.func @transform_1(%arg0: i32, %arg1: i32) -> (i32, i32) {
    %c0_i32 = arith.constant 0 : i32
    %c0_i32_0 = arith.constant 0 : i32
    return %c0_i32, %arg0 : i32, i32
  }
  func.func @transform_2(%arg0: i32, %arg1: i32) -> (i32, i32) {
    %c0_i32 = arith.constant 0 : i32
    return %arg1, %arg0 : i32, i32
  }
}

</mosaic_0001>

<bundles_post_ra>
// kernel: tpu_custom_call.1
= control target key start
LH: loop header
LB: loop body
LE: loop exit
PB: predicated region body
PF: predicated region fallthrough
CT: control target
= control target key end

     0   :  { %7 = vsyncpa [#allocation3], 0  ;;  %s157_s0 = inlined_call_operand.hbm [shape: f32[2,256], index: 0, kind: input, shape index: {}]   ;;  %s158_s1 = inlined_call_operand.vmem [shape: f32[1,256], index: 1, kind: input, shape index: {}]   ;;  %s159_s2 = inlined_call_operand.hbm [shape: f32[2,256], index: 2, kind: output, shape index: {}]  }
   0x1   :  { %8 = vsyncpa [#allocation4], 0  ;;  %s112_s9 = smov [#allocation2]   ;;  %s64_s13 = scalar_lea.hbm %s157_s0, 64 }
   0x2   :  { %s15_s10 = sshll.u32 %s112_s9, 4  ;;  %p65_p0 = scmp.ne.s32.totalorder %s157_s0, %s64_s13  ;;  %s16_s10 = int_to_ptr.vmem [resolvable:$true] %s15_s10 }
   0x3   :  { %p68_p1 = scmp.lt.u32.totalorder %s64_s13, %s157_s0 }
   0x5   :  { %p70_p2 = pnand %p68_p1, %p65_p0 }
   0x7   :  { %73 = shalt.err (!%p70_p2)
}
   0x8   :  { %s74_s18 = scalar_lea.vmem %s16_s10, 64  ;;  %p79_p4 = scmp.lt.s32.totalorder %s16_s10, %s16_s10 }
   0x9   :  { %p75_p3 = scmp.ne.s32.totalorder %s16_s10, %s74_s18  ;;  %p80_p5 = scmp.lt.s32.totalorder %s74_s18, %s74_s18 }
   0xb   :  { %p81_p6 = por %p80_p5, %p79_p4 }
   0xd   :  { %p82_p7 = pnand %p81_p6, %p75_p3 }
   0xf   :  { %85 = shalt.err (!%p82_p7)
}
  0x10   :  { %18 = dma.hbm_to_vmem [thread:$0]  %s157_s0, 64, %s16_s10, [#allocation3]  }
  0x11   :  { %108 = dma.done.wait [#allocation3], 64  }
  0x12   :  { %109 = vsyncadd [#allocation3], 4294967232  ;;  %v27_v0 = vlaneseq  ;;  %v113_v1 = vmov 1983009808   ;;  %v25_v7 = vld [vmem:[%s158_s1] sm:$0x3] }
  0x13   :  { %v37_v2 = vunpack.c.l.s4 %v113_v1  ;;  %v24_v12 = vld [vmem:[#allocation2] sm:$0xf]  ;;  %s114_s23 = smov [#allocation5]  }
  0x14   :  { %v28_v3 = vshrl.u32 %v27_v0, 7  ;;  %s52_s0 = sshll.u32 %s114_s23, 4  ;;  %s53_s0 = int_to_ptr.vmem [resolvable:$true] %s52_s0 }
  0x15   :  { %v38_v6 = vunpack.c.0.s8 %v37_v2  ;;  %s86_s24 = scalar_lea.vmem %s53_s0, 64  ;;  %p91_p9 = scmp.lt.s32.totalorder %s53_s0, %s53_s0 }
  0x16   :  { %v29_v4 = vsub.s32 0, %v28_v3  ;;  %v33_v5 = vsub.s32 1, %v28_v3  ;;  %p87_p8 = scmp.ne.s32.totalorder %s53_s0, %s86_s24  ;;  %p92_p10 = scmp.lt.s32.totalorder %s86_s24, %s86_s24 }
  0x17   :  { %v41_v10 = vsub.s32 %v38_v6, %v28_v3 }
  0x18   :  { %v30_v8 = vrot.slane %v25_v7, %v29_v4  ;;  %v34_v9 = vrot.slane %v25_v7, %v33_v5  ;;  %p93_p11 = por %p92_p10, %p91_p9 }
  0x1a   :  { %v35_v11 = vcombine.low %v30_v8, %v34_v9  ;;  %p94_p12 = pnand %p93_p11, %p87_p8 }
  0x1c   :  { %v42_v13 = vrot.slane %v35_v11, %v41_v10 }
  0x1e   :  { %v44_v14 = vadd.f32 %v42_v13, %v24_v12 }
  0x20   :  { %45 = vst [vmem:[#allocation5] sm:$0xf] %v44_v14 }
  0x21   :  { %97 = shalt.err (!%p94_p12)
}
  0x22   :  { %s98_s26 = scalar_lea.hbm %s159_s2, 64 }
  0x23   :  { %p99_p13 = scmp.ne.s32.totalorder %s159_s2, %s98_s26  ;;  %p102_p0 = scmp.lt.u32.totalorder %s98_s26, %s159_s2 }
  0x25   :  { %p104_p1 = pnand %p102_p0, %p99_p13 }
  0x27   :  { %107 = shalt.err (!%p104_p1)
}
  0x28   :  { %55 = dma.vmem_to_hbm [thread:$0]  %s53_s0, 64, %s159_s2, [#allocation4]  }
  0x29   :  { %110 = dma.done.wait [#allocation4], 64  }
  0x2a   :  { %111 = vsyncadd [#allocation4], 4294967232 }
  0x2b   :  { %59 = vsyncpa [#allocation3], 1 }
  0x2c   :  { %60 = vsyncpa [#allocation4], 1 }

</bundles_post_ra>
